<compile_context>
chip_gen: v7x
topology: tpu7x:2x2x1
jax: 0.10.0
libtpu: 0.0.40
codegen_flags: <defaults>
</compile_context>

<pallas_src>
import functools
import math

import jax
import jax.numpy as jnp
from jax.experimental import pallas as pl
from jax.experimental.pallas import tpu as pltpu

EPS = 1e-5
_LANE = 128
_SUBLANE = 8


def _round_up(x, m):
    return (x + m - 1) // m * m


# ---------------------------------------------------------------------------
# One-time probe: direction/availability of pltpu.roll on this build/device.
# ---------------------------------------------------------------------------
@functools.lru_cache(maxsize=None)
def _roll_sign():
    """+1 if pltpu.roll matches np.roll, -1 if reversed, 0 -> slice fallback."""
    def probe(o_ref):
        o_ref[...] = pltpu.roll(
            jax.lax.broadcasted_iota(jnp.int32, (_SUBLANE, _LANE), 1), 1, 1)

    try:
        row = pl.pallas_call(
            probe,
            out_shape=jax.ShapeDtypeStruct((_SUBLANE, _LANE), jnp.int32))()
        r0 = int(row[0, 0])
        r1 = int(row[0, 1])
        rl = int(row[0, _LANE - 1])
        if r1 == 0 and r0 == _LANE - 1:
            return 1
        if r0 == 1 and rl == 0:
            return -1
    except Exception:
        pass
    return 0


# ---------------------------------------------------------------------------
# In-kernel helpers (operate on loaded (C, M) tiles)
# ---------------------------------------------------------------------------
def _shifted_taps(x, roll_sign):
    """Return (x[:, l-1], x[:, l+1]) along the flattened lane axis.

    The shifts are circular; cross-sample / wrap-around columns are zeroed by
    the caller's multiplicative edge masks.
    """
    m = x.shape[1]
    if roll_sign == 1:
        return pltpu.roll(x, 1, 1), pltpu.roll(x, m - 1, 1)
    if roll_sign == -1:
        return pltpu.roll(x, m - 1, 1), pltpu.roll(x, 1, 1)
    # Fallback (no pltpu.roll): proven slice/concat construction.
    zcol = jnp.zeros((x.shape[0], 1), x.dtype)
    return (jnp.concatenate([zcol, x[:, :m - 1]], axis=1),
            jnp.concatenate([x[:, 1:], zcol], axis=1))


def _conv_k3(x, w_fused, b_col, keep_m1, keep_p1, roll_sign, mxu_dtype):
    """kernel_size=3 / padding=1 conv over a flattened (C, M) tile as ONE MXU
    contraction: (C_out, 3*C_in) @ (3*C_in, M) + bias column."""
    x_m1, x_p1 = _shifted_taps(x, roll_sign)
    stacked = jnp.concatenate([x_m1 * keep_m1, x, x_p1 * keep_p1], axis=0)
    return jnp.dot(w_fused.astype(mxu_dtype), stacked.astype(mxu_dtype),
                   preferred_element_type=jnp.float32) + b_col


def _partial_stats(y, valid):
    """Masked single-pass per-channel stats of a (C, M) tile: (C,2)=[sum,sumsq]."""
    yv = y * valid
    return jnp.concatenate([jnp.sum(yv, axis=1, keepdims=True),
                            jnp.sum(yv * yv, axis=1, keepdims=True)], axis=1)


def _bn_scale_bias(total_sum, total_sumsq, count, gamma_col, beta_col):
    """Training-mode BatchNorm folded into a per-channel affine y*scale+bias."""
    mean = total_sum / count
    var = jnp.maximum(total_sumsq / count - mean * mean, 0.0)
    # TODO(synk): shifted/Welford combine if |mean| >> std at very large N*L.
    scale = gamma_col * jax.lax.rsqrt(var + EPS)
    return scale, beta_col - mean * scale


# ---------------------------------------------------------------------------
# Kernels
# ---------------------------------------------------------------------------
def _fused_kernel(count, has_proj, roll_sign, mxu_dtype, *refs):
    """Whole residual block in one kernel (small-problem fast path)."""
    if has_proj:
        (x_ref, km1_ref, kp1_ref, val_ref,
         w1_ref, b1_ref, g1_ref, be1_ref,
         w2_ref, b2_ref, g2_ref, be2_ref,
         ws_ref, bs_ref, gs_ref, bes_ref, out_ref) = refs
    else:
        (x_ref, km1_ref, kp1_ref, val_ref,
         w1_ref, b1_ref, g1_ref, be1_ref,
         w2_ref, b2_ref, g2_ref, be2_ref, out_ref) = refs

    x = x_ref[...]
    km1, kp1, valid = km1_ref[...], kp1_ref[...], val_ref[...]

    h1 = _conv_k3(x, w1_ref[...], b1_ref[...], km1, kp1, roll_sign, mxu_dtype)
    st = _partial_stats(h1, valid)
    sc, bi = _bn_scale_bias(st[:, :1], st[:, 1:], count, g1_ref[...], be1_ref[...])
    a = jnp.maximum(h1 * sc + bi, 0.0)                       # bn1 + relu

    h2 = _conv_k3(a, w2_ref[...], b2_ref[...], km1, kp1, roll_sign, mxu_dtype)
    st = _partial_stats(h2, valid)
    sc, bi = _bn_scale_bias(st[:, :1], st[:, 1:], count, g2_ref[...], be2_ref[...])
    y = h2 * sc + bi                                         # bn2

    if has_proj:
        s = jnp.dot(ws_ref[...].astype(mxu_dtype), x.astype(mxu_dtype),
                    preferred_element_type=jnp.float32) + bs_ref[...]
        st = _partial_stats(s, valid)
        sc, bi = _bn_scale_bias(st[:, :1], st[:, 1:], count,
                                gs_ref[...], bes_ref[...])
        y = y + s * sc + bi                                  # shortcut conv + bn
    else:
        y = y + x                                            # identity shortcut
    out_ref[...] = jnp.maximum(y, 0.0)


def _stage1_kernel(has_proj, roll_sign, mxu_dtype, *refs):
    """conv1 (+ bn1 statistics) and, for the projection shortcut, ONLY the
    statistics of the 1x1 conv (the conv itself is recomputed in stage 3)."""
    if has_proj:
        (x_ref, km1_ref, kp1_ref, val_ref, w1_ref, b1_ref, ws_ref, bs_ref,
         h1_ref, st1_ref, sts_ref) = refs
    else:
        (x_ref, km1_ref, kp1_ref, val_ref, w1_ref, b1_ref,
         h1_ref, st1_ref) = refs
    x = x_ref[...]
    valid = val_ref[...]
    h1 = _conv_k3(x, w1_ref[...], b1_ref[...], km1_ref[...], kp1_ref[...],
                  roll_sign, mxu_dtype)
    h1_ref[...] = h1
    st1_ref[0] = _partial_stats(h1, valid)
    if has_proj:
        s = jnp.dot(ws_ref[...].astype(mxu_dtype), x.astype(mxu_dtype),
                    preferred_element_type=jnp.float32) + bs_ref[...]
        sts_ref[0] = _partial_stats(s, valid)


def _stage2_kernel(roll_sign, mxu_dtype, h1_ref, km1_ref, kp1_ref, val_ref,
                   sc1_ref, bi1_ref, w2_ref, b2_ref, h2_ref, st2_ref):
    """bn1 + ReLU + conv2 (+ bn2 statistics)."""
    a = jnp.maximum(h1_ref[...] * sc1_ref[...] + bi1_ref[...], 0.0)
    h2 = _conv_k3(a, w2_ref[...], b2_ref[...], km1_ref[...], kp1_ref[...],
                  roll_sign, mxu_dtype)
    h2_ref[...] = h2
    st2_ref[0] = _partial_stats(h2, val_ref[...])


def _stage3_proj_kernel(mxu_dtype, h2_ref, x_ref, sc2_ref, bi2_ref,
                        ws_ref, bs_ref, scs_ref, bis_ref, out_ref):
    """bn2 + recomputed 1x1-conv shortcut + its BN + add + final ReLU."""
    s = jnp.dot(ws_ref[...].astype(mxu_dtype), x_ref[...].astype(mxu_dtype),
                preferred_element_type=jnp.float32) + bs_ref[...]
    y = (h2_ref[...] * sc2_ref[...] + bi2_ref[...]
         + s * scs_ref[...] + bis_ref[...])
    out_ref[...] = jnp.maximum(y, 0.0)


def _stage3_id_kernel(h2_ref, x_ref, sc2_ref, bi2_ref, out_ref):
    """bn2 + identity shortcut + final ReLU."""
    out_ref[...] = jnp.maximum(
        h2_ref[...] * sc2_ref[...] + bi2_ref[...] + x_ref[...], 0.0)


# ---------------------------------------------------------------------------
# Wrapper-side helpers
# ---------------------------------------------------------------------------
def _vmem_capacity_bytes():
    try:
        cap = getattr(pltpu.get_tpu_info(), "vmem_capacity_bytes", None)
        if cap:
            return int(cap)
    except Exception:
        pass
    return 64 * 1024 * 1024        # v7x worst case


def _cparams(n_grid_axes, cap):
    # <= 48 MiB scoped on v7x (64 MiB physical), ~96 MiB on v5e/v6e (128 MiB).
    return pltpu.CompilerParams(
        dimension_semantics=("parallel",) * n_grid_axes if n_grid_axes else None,
        vmem_limit_bytes=int(min(cap * 3 // 4, 100 * 1024 * 1024)))


def _fuse_taps(w, c_out_pad, c_in_pad):
    """PyTorch conv weight (Cout, Cin, 3) -> zero-padded (Cout_pad, 3*Cin_pad)
    with W[co, k*Cin_pad + ci] = w[co, ci, k] (tap k multiplies x[:, l-1+k])."""
    c_out, c_in, k = w.shape
    w = jnp.pad(jnp.asarray(w, jnp.float32),
                ((0, c_out_pad - c_out), (0, c_in_pad - c_in), (0, 0)))
    return jnp.transpose(w, (0, 2, 1)).reshape(c_out_pad, k * c_in_pad)


def _col(v, c_pad):
    v = jnp.asarray(v, jnp.float32).reshape(-1)
    return jnp.pad(v, (0, c_pad - v.shape[0])).reshape(c_pad, 1)


def _pick_tile_cols(l, c_in_pad, c_out_pad, m_true, cap, max_tile_cols):
    """Tile width (flattened batch*length columns) for the 3-stage path.

    Tiles hold whole samples (multiple of L) and whole vregs (multiple of 128
    lanes), so the k=3 taps never need halo columns from a neighbouring tile.
    The width is the largest that keeps the per-step working set (double
    buffered in/out blocks + the (3C, tm) stacked MXU operand and shifted-tap
    temps) within about half of the chip's VMEM.
    """
    base = l * _LANE // math.gcd(l, _LANE)                  # lcm(L, 128)
    per_col = 4 * (8 * c_in_pad + 12 * c_out_pad)           # f32 bytes / column
    budget = cap // 2
    tm = max(base, budget // per_col // base * base)
    tm = min(tm, _round_up(m_true, base))                   # never overshoot
    if max_tile_cols is not None:
        tm = max(base, min(tm, max_tile_cols // base * base))
    # TODO(synk): if even `base` columns exceed the budget (huge C, long odd L),
    # add intra-sample L tiling with k=3 halo columns.
    return tm


# ---------------------------------------------------------------------------
# Public entry point
# ---------------------------------------------------------------------------
def residual_block(x_ncl, params, *, use_bf16_mxu=False, fused=None,
                   max_tile_cols=None):
    """ResidualBlock forward (training-mode BN) on (N, Cin, L) f32 -> (N, Cout, L)."""
    n, c_in, l = x_ncl.shape
    c_out = params["w1"].shape[0]
    has_proj = c_in != c_out
    f32 = jnp.float32
    # bf16 MXU operands (f32 accumulate) are a big lever on v6e/v7x but break
    # the 1e-4 parity with the f32 reference, so they are opt-in.
    mxu_dtype = jnp.bfloat16 if use_bf16_mxu else f32
    roll_sign = _roll_sign()

    c_in_pad = _round_up(c_in, _SUBLANE)
    c_out_pad = _round_up(c_out, _SUBLANE)
    m_true = n * l
    count = float(m_true)
    cap = _vmem_capacity_bytes()

    # ---- dispatch: single fused call vs. tiled 3-stage pipeline ------------
    per_col_fused = 4 * (2 * c_in_pad + 3 * max(c_in_pad, c_out_pad)
                         + 6 * c_out_pad)
    if fused is None:
        fused = (_round_up(m_true, _LANE) * per_col_fused
                 <= min(cap // 4, 16 * 1024 * 1024))

    if fused:
        tm = m_pad = _round_up(m_true, _LANE)
        g = 1
    else:
        tm = _pick_tile_cols(l, c_in_pad, c_out_pad, m_true, cap, max_tile_cols)
        m_pad = _round_up(m_true, tm)
        g = m_pad // tm

    # ---- channel-major flattened operands and sample-boundary masks --------
    x_cm = jnp.transpose(x_ncl.astype(f32), (1, 0, 2)).reshape(c_in, m_true)
    x_cm = jnp.pad(x_cm, ((0, c_in_pad - c_in), (0, m_pad - m_true)))
    colw = jnp.arange(m_pad, dtype=jnp.int32)
    pos = colw % l
    keep_m1 = (pos != 0).astype(f32)[None, :]       # zero the l-1 tap at l == 0
    keep_p1 = (pos != l - 1).astype(f32)[None, :]   # zero the l+1 tap at l == L-1
    valid = (colw < m_true).astype(f32)[None, :]    # real (non-pad) columns

    w1f = _fuse_taps(params["w1"], c_out_pad, c_in_pad)
    w2f = _fuse_taps(params["w2"], c_out_pad, c_out_pad)
    b1c, g1c, be1c = (_col(params[k], c_out_pad) for k in ("b1", "g1", "be1"))
    b2c, g2c, be2c = (_col(params[k], c_out_pad) for k in ("b2", "g2", "be2"))
    if has_proj:
        ws = jnp.pad(jnp.asarray(params["ws"][:, :, 0], f32),
                     ((0, c_out_pad - c_out), (0, c_in_pad - c_in)))
        bsc, gsc, besc = (_col(params[k], c_out_pad) for k in ("bs", "gs", "bes"))

    conv1_flops = 2 * m_true * 3 * c_in * c_out
    conv2_flops = 2 * m_true * 3 * c_out * c_out
    proj_flops = 2 * m_true * c_in * c_out if has_proj else 0
    x_bytes = 4 * c_in_pad * m_pad
    act_bytes = 4 * c_out_pad * m_pad

    if fused:
        # ---- small-problem fast path: everything in one kernel -------------
        args = [x_cm, keep_m1, keep_p1, valid,
                w1f, b1c, g1c, be1c, w2f, b2c, g2c, be2c]
        if has_proj:
            args += [ws, bsc, gsc, besc]
        out_cm = pl.pallas_call(
            functools.partial(_fused_kernel, count, has_proj, roll_sign,
                              mxu_dtype),
            out_shape=jax.ShapeDtypeStruct((c_out_pad, m_pad), f32),
            compiler_params=_cparams(0, cap),
            cost_estimate=pl.CostEstimate(
                flops=conv1_flops + conv2_flops + proj_flops,
                transcendentals=0,
                bytes_accessed=x_bytes + act_bytes),
        )(*args)
    else:
        # ---- tiled 3-stage pipeline (global training-BN statistics) --------
        x_spec = pl.BlockSpec((c_in_pad, tm), lambda i: (0, i))
        act_spec = pl.BlockSpec((c_out_pad, tm), lambda i: (0, i))
        mask_spec = pl.BlockSpec((1, tm), lambda i: (0, i))
        stat_spec = pl.BlockSpec((1, c_out_pad, 2), lambda i: (i, 0, 0))
        par = lambda a: pl.BlockSpec(a.shape, lambda i: (0,) * a.ndim)
        act_sds = jax.ShapeDtypeStruct((c_out_pad, m_pad), f32)
        stat_sds = jax.ShapeDtypeStruct((g, c_out_pad, 2), f32)
        cparams = _cparams(1, cap)
        grid = (g,)

        # -- stage 1: conv1 (+ shortcut-conv statistics only) ----------------
        in_specs = [x_spec, mask_spec, mask_spec, mask_spec, par(w1f), par(b1c)]
        args = [x_cm, keep_m1, keep_p1, valid, w1f, b1c]
        out_specs, out_shape = [act_spec, stat_spec], [act_sds, stat_sds]
        if has_proj:
            in_specs += [par(ws), par(bsc)]
            args += [ws, bsc]
            out_specs.append(stat_spec)
            out_shape.append(stat_sds)
        res = pl.pallas_call(
            functools.partial(_stage1_kernel, has_proj, roll_sign, mxu_dtype),
            grid=grid, in_specs=in_specs,
            out_specs=tuple(out_specs), out_shape=tuple(out_shape),
            compiler_params=cparams,
            cost_estimate=pl.CostEstimate(
                flops=conv1_flops + proj_flops, transcendentals=0,
                bytes_accessed=x_bytes + act_bytes),
        )(*args)
        if has_proj:
            h1, st1, sts = res
        else:
            h1, st1 = res
        tot = jnp.sum(st1, axis=0)
        sc1, bi1 = _bn_scale_bias(tot[:, :1], tot[:, 1:], count, g1c, be1c)

        # -- stage 2: bn1 + ReLU + conv2 --------------------------------------
        h2, st2 = pl.pallas_call(
            functools.partial(_stage2_kernel, roll_sign, mxu_dtype),
            grid=grid,
            in_specs=[act_spec, mask_spec, mask_spec, mask_spec,
                      par(sc1), par(bi1), par(w2f), par(b2c)],
            out_specs=(act_spec, stat_spec), out_shape=(act_sds, stat_sds),
            compiler_params=cparams,
            cost_estimate=pl.CostEstimate(
                flops=conv2_flops, transcendentals=0,
                bytes_accessed=2 * act_bytes),
        )(h1, keep_m1, keep_p1, valid, sc1, bi1, w2f, b2c)
        tot = jnp.sum(st2, axis=0)
        sc2, bi2 = _bn_scale_bias(tot[:, :1], tot[:, 1:], count, g2c, be2c)

        # -- stage 3: bn2 + shortcut (+ its BN) + add + final ReLU ------------
        if has_proj:
            tot = jnp.sum(sts, axis=0)
            scs, bis = _bn_scale_bias(tot[:, :1], tot[:, 1:], count, gsc, besc)
            out_cm = pl.pallas_call(
                functools.partial(_stage3_proj_kernel, mxu_dtype),
                grid=grid,
                in_specs=[act_spec, x_spec, par(sc2), par(bi2),
                          par(ws), par(bsc), par(scs), par(bis)],
                out_specs=act_spec, out_shape=act_sds,
                compiler_params=cparams,
                cost_estimate=pl.CostEstimate(
                    flops=proj_flops + 6 * m_true * c_out, transcendentals=0,
                    bytes_accessed=2 * act_bytes + x_bytes),
            )(h2, x_cm, sc2, bi2, ws, bsc, scs, bis)
        else:
            out_cm = pl.pallas_call(
                _stage3_id_kernel,
                grid=grid,
                in_specs=[act_spec, x_spec, par(sc2), par(bi2)],
                out_specs=act_spec, out_shape=act_sds,
                compiler_params=cparams,
                cost_estimate=pl.CostEstimate(
                    flops=4 * m_true * c_out, transcendentals=0,
                    bytes_accessed=2 * act_bytes + x_bytes),
            )(h2, x_cm, sc2, bi2)

    out = out_cm[:c_out, :m_true].reshape(c_out, n, l)
    return jnp.transpose(out, (1, 0, 2))


# ---------------------------------------------------------------------------
# Pure-JAX reference (mirrors the PyTorch forward) for a correctness check
# ---------------------------------------------------------------------------
def _ref_forward(x, p, has_proj):
    def conv1d(x, w, b, pad):
        y = jax.lax.conv_general_dilated(
            x, w, window_strides=(1,), padding=[(pad, pad)],
            dimension_numbers=("NCH", "OIH", "NCH"))
        return y + b[None, :, None]

    def bn(y, g, be):
        mean = jnp.mean(y, axis=(0, 2), keepdims=True)
        var = jnp.mean((y - mean) ** 2, axis=(0, 2), keepdims=True)
        return ((y - mean) / jnp.sqrt(var + EPS) * g[None, :, None]
                + be[None, :, None])

    h = jax.nn.relu(bn(conv1d(x, p["w1"], p["b1"], 1), p["g1"], p["be1"]))
    h = bn(conv1d(h, p["w2"], p["b2"], 1), p["g2"], p["be2"])
    s = bn(conv1d(x, p["ws"], p["bs"], 0), p["gs"], p["bes"]) if has_proj else x
    return jax.nn.relu(h + s)


def _make_params(key, c_in, c_out):
    ks = jax.random.split(key, 12)
    f32 = jnp.float32
    p = {
        "w1": 0.3 * jax.random.normal(ks[0], (c_out, c_in, 3), f32),
        "b1": 0.1 * jax.random.normal(ks[1], (c_out,), f32),
        "g1": 1.0 + 0.1 * jax.random.normal(ks[2], (c_out,), f32),
        "be1": 0.1 * jax.random.normal(ks[3], (c_out,), f32),
        "w2": 0.3 * jax.random.normal(ks[4], (c_out, c_out, 3), f32),
        "b2": 0.1 * jax.random.normal(ks[5], (c_out,), f32),
        "g2": 1.0 + 0.1 * jax.random.normal(ks[6], (c_out,), f32),
        "be2": 0.1 * jax.random.normal(ks[7], (c_out,), f32),
    }
    if c_in != c_out:
        p["ws"] = 0.3 * jax.random.normal(ks[8], (c_out, c_in, 1), f32)
        p["bs"] = 0.1 * jax.random.normal(ks[9], (c_out,), f32)
        p["gs"] = 1.0 + 0.1 * jax.random.normal(ks[10], (c_out,), f32)
        p["bes"] = 0.1 * jax.random.normal(ks[11], (c_out,), f32)
    return p


if __name__ == "__main__":
    key = jax.random.PRNGKey(0)
    kp1, kp2, kp3, kp4, kx1, kx2, kx3, kx4 = jax.random.split(key, 8)

    def _check(out, ref, name):
        assert out.shape == ref.shape, (name, out.shape, ref.shape)
        err = float(jnp.max(jnp.abs(out - ref)))
        assert jnp.allclose(out, ref, rtol=1e-4, atol=1e-4), (name, err)

    # Cases 1-2: tiny shapes -> single fused pallas_call (small-problem path).
    n, c_in, c_out, l = 2, 4, 8, 16
    x1 = jax.random.normal(kx1, (n, c_in, l), jnp.float32)
    p1 = _make_params(kp1, c_in, c_out)
    _check(jax.block_until_ready(residual_block(x1, p1)),
           _ref_forward(x1, p1, True), "fused/projection")

    x2 = jax.random.normal(kx2, (n, c_out, l), jnp.float32)
    p2 = _make_params(kp2, c_out, c_out)
    _check(jax.block_until_ready(residual_block(x2, p2)),
           _ref_forward(x2, p2, False), "fused/identity")

    # Cases 3-4: force the tiled 3-stage path with a multi-step grid
    # (cross-tile BN statistics reduction + BlockSpec pipelining).
    n, c_in, c_out, l = 16, 8, 16, 64
    x3 = jax.random.normal(kx3, (n, c_in, l), jnp.float32)
    p3 = _make_params(kp3, c_in, c_out)
    _check(jax.block_until_ready(
               residual_block(x3, p3, fused=False, max_tile_cols=512)),
           _ref_forward(x3, p3, True), "tiled/projection")

    x4 = jax.random.normal(kx4, (n, c_out, l), jnp.float32)
    p4 = _make_params(kp4, c_out, c_out)
    _check(jax.block_until_ready(
               residual_block(x4, p4, fused=False, max_tile_cols=512)),
           _ref_forward(x4, p4, False), "tiled/identity")

    print("KERNEL_OK")
</pallas_src>

<mosaic_0001>
module attributes {stable_mosaic.version = 11 : i64} {
  func.func @_fused_kernel(%arg0: memref<8x128xf32, #tpu.memory_space<vmem>>, %arg1: memref<1x128xf32, #tpu.memory_space<vmem>>, %arg2: memref<1x128xf32, #tpu.memory_space<vmem>>, %arg3: memref<1x128xf32, #tpu.memory_space<vmem>>, %arg4: memref<8x24xf32, #tpu.memory_space<vmem>>, %arg5: memref<8x1xf32, #tpu.memory_space<vmem>>, %arg6: memref<8x1xf32, #tpu.memory_space<vmem>>, %arg7: memref<8x1xf32, #tpu.memory_space<vmem>>, %arg8: memref<8x24xf32, #tpu.memory_space<vmem>>, %arg9: memref<8x1xf32, #tpu.memory_space<vmem>>, %arg10: memref<8x1xf32, #tpu.memory_space<vmem>>, %arg11: memref<8x1xf32, #tpu.memory_space<vmem>>, %arg12: memref<8x8xf32, #tpu.memory_space<vmem>>, %arg13: memref<8x1xf32, #tpu.memory_space<vmem>>, %arg14: memref<8x1xf32, #tpu.memory_space<vmem>>, %arg15: memref<8x1xf32, #tpu.memory_space<vmem>>, %arg16: memref<8x128xf32, #tpu.memory_space<vmem>>) attributes {dimension_semantics = [], scalar_prefetch = 0 : i64, scratch_operands = 0 : i64, tpu.core_type = #tpu.core_type<tc>} {
    %c0 = arith.constant 0 : index
    %c0_0 = arith.constant 0 : index
    %0 = vector.load %arg0[%c0, %c0_0] : memref<8x128xf32, #tpu.memory_space<vmem>>, vector<8x128xf32>
    %c0_1 = arith.constant 0 : index
    %c0_2 = arith.constant 0 : index
    %1 = vector.load %arg1[%c0_1, %c0_2] : memref<1x128xf32, #tpu.memory_space<vmem>>, vector<1x128xf32>
    %c0_3 = arith.constant 0 : index
    %c0_4 = arith.constant 0 : index
    %2 = vector.load %arg2[%c0_3, %c0_4] : memref<1x128xf32, #tpu.memory_space<vmem>>, vector<1x128xf32>
    %c0_5 = arith.constant 0 : index
    %c0_6 = arith.constant 0 : index
    %3 = vector.load %arg3[%c0_5, %c0_6] : memref<1x128xf32, #tpu.memory_space<vmem>>, vector<1x128xf32>
    %c0_7 = arith.constant 0 : index
    %c0_8 = arith.constant 0 : index
    %4 = vector.load %arg4[%c0_7, %c0_8] : memref<8x24xf32, #tpu.memory_space<vmem>>, vector<8x24xf32>
    %c0_9 = arith.constant 0 : index
    %c0_10 = arith.constant 0 : index
    %5 = vector.load %arg5[%c0_9, %c0_10] : memref<8x1xf32, #tpu.memory_space<vmem>>, vector<8x1xf32>
    %cst = arith.constant 0.000000e+00 : f32
    %6 = vector.broadcast %cst : f32 to vector<8x1xf32>
    %7 = vector.extract_strided_slice %0 {offsets = [0, 0], sizes = [8, 127], strides = [1, 1]} : vector<8x128xf32> to vector<8x127xf32>
    %8 = tpu.concatenate %6, %7 in 1 : vector<8x1xf32>, vector<8x127xf32> -> vector<8x128xf32>
    %9 = vector.extract_strided_slice %0 {offsets = [0, 1], sizes = [8, 127], strides = [1, 1]} : vector<8x128xf32> to vector<8x127xf32>
    %10 = tpu.concatenate %9, %6 in 1 : vector<8x127xf32>, vector<8x1xf32> -> vector<8x128xf32>
    %11 = vector.broadcast %1 : vector<1x128xf32> to vector<8x128xf32>
    %12 = arith.mulf %8, %11 : vector<8x128xf32>
    %13 = vector.broadcast %2 : vector<1x128xf32> to vector<8x128xf32>
    %14 = arith.mulf %10, %13 : vector<8x128xf32>
    %15 = tpu.concatenate %12, %0, %14 in 0 : vector<8x128xf32>, vector<8x128xf32>, vector<8x128xf32> -> vector<24x128xf32>
    %cst_11 = arith.constant dense<0.000000e+00> : vector<8x128xf32>
    %16 = tpu.matmul %4, %15, %cst_11 {dimension_numbers = #tpu.dot_dimension_numbers<[1], [0], [0], [1], [0, 0, 1, 1], [], []>} : vector<8x24xf32>, vector<24x128xf32>, vector<8x128xf32> -> vector<8x128xf32>
    %17 = vector.broadcast %5 : vector<8x1xf32> to vector<8x128xf32>
    %18 = arith.addf %16, %17 : vector<8x128xf32>
    %19 = vector.broadcast %3 : vector<1x128xf32> to vector<8x128xf32>
    %20 = arith.mulf %18, %19 : vector<8x128xf32>
    %cst_12 = arith.constant dense<0.000000e+00> : vector<8xf32>
    %21 = vector.multi_reduction <add>, %20, %cst_12 [1] : vector<8x128xf32> to vector<8xf32>
    %22 = vector.shape_cast %21 : vector<8xf32> to vector<8x1xf32>
    %23 = arith.mulf %20, %20 : vector<8x128xf32>
    %cst_13 = arith.constant dense<0.000000e+00> : vector<8xf32>
    %24 = vector.multi_reduction <add>, %23, %cst_13 [1] : vector<8x128xf32> to vector<8xf32>
    %25 = vector.shape_cast %24 : vector<8xf32> to vector<8x1xf32>
    %26 = tpu.concatenate %22, %25 in 1 : vector<8x1xf32>, vector<8x1xf32> -> vector<8x2xf32>
    %27 = vector.extract_strided_slice %26 {offsets = [0, 0], sizes = [8, 1], strides = [1, 1]} : vector<8x2xf32> to vector<8x1xf32>
    %28 = vector.extract_strided_slice %26 {offsets = [0, 1], sizes = [8, 1], strides = [1, 1]} : vector<8x2xf32> to vector<8x1xf32>
    %c0_14 = arith.constant 0 : index
    %c0_15 = arith.constant 0 : index
    %29 = vector.load %arg6[%c0_14, %c0_15] : memref<8x1xf32, #tpu.memory_space<vmem>>, vector<8x1xf32>
    %c0_16 = arith.constant 0 : index
    %c0_17 = arith.constant 0 : index
    %30 = vector.load %arg7[%c0_16, %c0_17] : memref<8x1xf32, #tpu.memory_space<vmem>>, vector<8x1xf32>
    %cst_18 = arith.constant 3.200000e+01 : f32
    %31 = vector.broadcast %cst_18 : f32 to vector<8x1xf32>
    %32 = arith.divf %27, %31 : vector<8x1xf32>
    %cst_19 = arith.constant 3.200000e+01 : f32
    %33 = vector.broadcast %cst_19 : f32 to vector<8x1xf32>
    %34 = arith.divf %28, %33 : vector<8x1xf32>
    %35 = arith.mulf %32, %32 : vector<8x1xf32>
    %36 = arith.subf %34, %35 : vector<8x1xf32>
    %cst_20 = arith.constant 0.000000e+00 : f32
    %37 = vector.broadcast %cst_20 : f32 to vector<8x1xf32>
    %38 = arith.maximumf %36, %37 : vector<8x1xf32>
    %cst_21 = arith.constant 9.99999974E-6 : f32
    %39 = vector.broadcast %cst_21 : f32 to vector<8x1xf32>
    %40 = arith.addf %38, %39 : vector<8x1xf32>
    %41 = math.rsqrt %40 : vector<8x1xf32>
    %42 = arith.mulf %29, %41 : vector<8x1xf32>
    %43 = arith.mulf %32, %42 : vector<8x1xf32>
    %44 = arith.subf %30, %43 : vector<8x1xf32>
    %45 = vector.broadcast %42 : vector<8x1xf32> to vector<8x128xf32>
    %46 = arith.mulf %18, %45 : vector<8x128xf32>
    %47 = vector.broadcast %44 : vector<8x1xf32> to vector<8x128xf32>
    %48 = arith.addf %46, %47 : vector<8x128xf32>
    %cst_22 = arith.constant 0.000000e+00 : f32
    %49 = vector.broadcast %cst_22 : f32 to vector<8x128xf32>
    %50 = arith.maximumf %48, %49 : vector<8x128xf32>
    %c0_23 = arith.constant 0 : index
    %c0_24 = arith.constant 0 : index
    %51 = vector.load %arg8[%c0_23, %c0_24] : memref<8x24xf32, #tpu.memory_space<vmem>>, vector<8x24xf32>
    %c0_25 = arith.constant 0 : index
    %c0_26 = arith.constant 0 : index
    %52 = vector.load %arg9[%c0_25, %c0_26] : memref<8x1xf32, #tpu.memory_space<vmem>>, vector<8x1xf32>
    %cst_27 = arith.constant 0.000000e+00 : f32
    %53 = vector.broadcast %cst_27 : f32 to vector<8x1xf32>
    %54 = vector.extract_strided_slice %50 {offsets = [0, 0], sizes = [8, 127], strides = [1, 1]} : vector<8x128xf32> to vector<8x127xf32>
    %55 = tpu.concatenate %53, %54 in 1 : vector<8x1xf32>, vector<8x127xf32> -> vector<8x128xf32>
    %56 = vector.extract_strided_slice %50 {offsets = [0, 1], sizes = [8, 127], strides = [1, 1]} : vector<8x128xf32> to vector<8x127xf32>
    %57 = tpu.concatenate %56, %53 in 1 : vector<8x127xf32>, vector<8x1xf32> -> vector<8x128xf32>
    %58 = vector.broadcast %1 : vector<1x128xf32> to vector<8x128xf32>
    %59 = arith.mulf %55, %58 : vector<8x128xf32>
    %60 = vector.broadcast %2 : vector<1x128xf32> to vector<8x128xf32>
    %61 = arith.mulf %57, %60 : vector<8x128xf32>
    %62 = tpu.concatenate %59, %50, %61 in 0 : vector<8x128xf32>, vector<8x128xf32>, vector<8x128xf32> -> vector<24x128xf32>
    %cst_28 = arith.constant dense<0.000000e+00> : vector<8x128xf32>
    %63 = tpu.matmul %51, %62, %cst_28 {dimension_numbers = #tpu.dot_dimension_numbers<[1], [0], [0], [1], [0, 0, 1, 1], [], []>} : vector<8x24xf32>, vector<24x128xf32>, vector<8x128xf32> -> vector<8x128xf32>
    %64 = vector.broadcast %52 : vector<8x1xf32> to vector<8x128xf32>
    %65 = arith.addf %63, %64 : vector<8x128xf32>
    %66 = vector.broadcast %3 : vector<1x128xf32> to vector<8x128xf32>
    %67 = arith.mulf %65, %66 : vector<8x128xf32>
    %cst_29 = arith.constant dense<0.000000e+00> : vector<8xf32>
    %68 = vector.multi_reduction <add>, %67, %cst_29 [1] : vector<8x128xf32> to vector<8xf32>
    %69 = vector.shape_cast %68 : vector<8xf32> to vector<8x1xf32>
    %70 = arith.mulf %67, %67 : vector<8x128xf32>
    %cst_30 = arith.constant dense<0.000000e+00> : vector<8xf32>
    %71 = vector.multi_reduction <add>, %70, %cst_30 [1] : vector<8x128xf32> to vector<8xf32>
    %72 = vector.shape_cast %71 : vector<8xf32> to vector<8x1xf32>
    %73 = tpu.concatenate %69, %72 in 1 : vector<8x1xf32>, vector<8x1xf32> -> vector<8x2xf32>
    %74 = vector.extract_strided_slice %73 {offsets = [0, 0], sizes = [8, 1], strides = [1, 1]} : vector<8x2xf32> to vector<8x1xf32>
    %75 = vector.extract_strided_slice %73 {offsets = [0, 1], sizes = [8, 1], strides = [1, 1]} : vector<8x2xf32> to vector<8x1xf32>
    %c0_31 = arith.constant 0 : index
    %c0_32 = arith.constant 0 : index
    %76 = vector.load %arg10[%c0_31, %c0_32] : memref<8x1xf32, #tpu.memory_space<vmem>>, vector<8x1xf32>
    %c0_33 = arith.constant 0 : index
    %c0_34 = arith.constant 0 : index
    %77 = vector.load %arg11[%c0_33, %c0_34] : memref<8x1xf32, #tpu.memory_space<vmem>>, vector<8x1xf32>
    %cst_35 = arith.constant 3.200000e+01 : f32
    %78 = vector.broadcast %cst_35 : f32 to vector<8x1xf32>
    %79 = arith.divf %74, %78 : vector<8x1xf32>
    %cst_36 = arith.constant 3.200000e+01 : f32
    %80 = vector.broadcast %cst_36 : f32 to vector<8x1xf32>
    %81 = arith.divf %75, %80 : vector<8x1xf32>
    %82 = arith.mulf %79, %79 : vector<8x1xf32>
    %83 = arith.subf %81, %82 : vector<8x1xf32>
    %cst_37 = arith.constant 0.000000e+00 : f32
    %84 = vector.broadcast %cst_37 : f32 to vector<8x1xf32>
    %85 = arith.maximumf %83, %84 : vector<8x1xf32>
    %cst_38 = arith.constant 9.99999974E-6 : f32
    %86 = vector.broadcast %cst_38 : f32 to vector<8x1xf32>
    %87 = arith.addf %85, %86 : vector<8x1xf32>
    %88 = math.rsqrt %87 : vector<8x1xf32>
    %89 = arith.mulf %76, %88 : vector<8x1xf32>
    %90 = arith.mulf %79, %89 : vector<8x1xf32>
    %91 = arith.subf %77, %90 : vector<8x1xf32>
    %92 = vector.broadcast %89 : vector<8x1xf32> to vector<8x128xf32>
    %93 = arith.mulf %65, %92 : vector<8x128xf32>
    %94 = vector.broadcast %91 : vector<8x1xf32> to vector<8x128xf32>
    %95 = arith.addf %93, %94 : vector<8x128xf32>
    %c0_39 = arith.constant 0 : index
    %c0_40 = arith.constant 0 : index
    %96 = vector.load %arg12[%c0_39, %c0_40] : memref<8x8xf32, #tpu.memory_space<vmem>>, vector<8x8xf32>
    %cst_41 = arith.constant dense<0.000000e+00> : vector<8x128xf32>
    %97 = tpu.matmul %96, %0, %cst_41 {dimension_numbers = #tpu.dot_dimension_numbers<[1], [0], [0], [1], [0, 0, 1, 1], [], []>} : vector<8x8xf32>, vector<8x128xf32>, vector<8x128xf32> -> vector<8x128xf32>
    %c0_42 = arith.constant 0 : index
    %c0_43 = arith.constant 0 : index
    %98 = vector.load %arg13[%c0_42, %c0_43] : memref<8x1xf32, #tpu.memory_space<vmem>>, vector<8x1xf32>
    %99 = vector.broadcast %98 : vector<8x1xf32> to vector<8x128xf32>
    %100 = arith.addf %97, %99 : vector<8x128xf32>
    %101 = vector.broadcast %3 : vector<1x128xf32> to vector<8x128xf32>
    %102 = arith.mulf %100, %101 : vector<8x128xf32>
    %cst_44 = arith.constant dense<0.000000e+00> : vector<8xf32>
    %103 = vector.multi_reduction <add>, %102, %cst_44 [1] : vector<8x128xf32> to vector<8xf32>
    %104 = vector.shape_cast %103 : vector<8xf32> to vector<8x1xf32>
    %105 = arith.mulf %102, %102 : vector<8x128xf32>
    %cst_45 = arith.constant dense<0.000000e+00> : vector<8xf32>
    %106 = vector.multi_reduction <add>, %105, %cst_45 [1] : vector<8x128xf32> to vector<8xf32>
    %107 = vector.shape_cast %106 : vector<8xf32> to vector<8x1xf32>
    %108 = tpu.concatenate %104, %107 in 1 : vector<8x1xf32>, vector<8x1xf32> -> vector<8x2xf32>
    %109 = vector.extract_strided_slice %108 {offsets = [0, 0], sizes = [8, 1], strides = [1, 1]} : vector<8x2xf32> to vector<8x1xf32>
    %110 = vector.extract_strided_slice %108 {offsets = [0, 1], sizes = [8, 1], strides = [1, 1]} : vector<8x2xf32> to vector<8x1xf32>
    %c0_46 = arith.constant 0 : index
    %c0_47 = arith.constant 0 : index
    %111 = vector.load %arg14[%c0_46, %c0_47] : memref<8x1xf32, #tpu.memory_space<vmem>>, vector<8x1xf32>
    %c0_48 = arith.constant 0 : index
    %c0_49 = arith.constant 0 : index
    %112 = vector.load %arg15[%c0_48, %c0_49] : memref<8x1xf32, #tpu.memory_space<vmem>>, vector<8x1xf32>
    %cst_50 = arith.constant 3.200000e+01 : f32
    %113 = vector.broadcast %cst_50 : f32 to vector<8x1xf32>
    %114 = arith.divf %109, %113 : vector<8x1xf32>
    %cst_51 = arith.constant 3.200000e+01 : f32
    %115 = vector.broadcast %cst_51 : f32 to vector<8x1xf32>
    %116 = arith.divf %110, %115 : vector<8x1xf32>
    %117 = arith.mulf %114, %114 : vector<8x1xf32>
    %118 = arith.subf %116, %117 : vector<8x1xf32>
    %cst_52 = arith.constant 0.000000e+00 : f32
    %119 = vector.broadcast %cst_52 : f32 to vector<8x1xf32>
    %120 = arith.maximumf %118, %119 : vector<8x1xf32>
    %cst_53 = arith.constant 9.99999974E-6 : f32
    %121 = vector.broadcast %cst_53 : f32 to vector<8x1xf32>
    %122 = arith.addf %120, %121 : vector<8x1xf32>
    %123 = math.rsqrt %122 : vector<8x1xf32>
    %124 = arith.mulf %111, %123 : vector<8x1xf32>
    %125 = arith.mulf %114, %124 : vector<8x1xf32>
    %126 = arith.subf %112, %125 : vector<8x1xf32>
    %127 = vector.broadcast %124 : vector<8x1xf32> to vector<8x128xf32>
    %128 = arith.mulf %100, %127 : vector<8x128xf32>
    %129 = arith.addf %95, %128 : vector<8x128xf32>
    %130 = vector.broadcast %126 : vector<8x1xf32> to vector<8x128xf32>
    %131 = arith.addf %129, %130 : vector<8x128xf32>
    %cst_54 = arith.constant 0.000000e+00 : f32
    %132 = vector.broadcast %cst_54 : f32 to vector<8x128xf32>
    %133 = arith.maximumf %131, %132 : vector<8x128xf32>
    %c0_55 = arith.constant 0 : index
    %c0_56 = arith.constant 0 : index
    %134 = vector.load %arg16[%c0_55, %c0_56] : memref<8x128xf32, #tpu.memory_space<vmem>>, vector<8x128xf32>
    tpu.vector_store %arg16[%c0_55, %c0_56], %133 {strides = array<i32>} : memref<8x128xf32, #tpu.memory_space<vmem>>, vector<8x128xf32>,
    return
  }
}

</mosaic_0001>

<bundles_post_ra>
// kernel: tpu_custom_call.1
= control target key start
LH: loop header
LB: loop body
LE: loop exit
PB: predicated region body
PF: predicated region fallthrough
CT: control target
= control target key end

     0   :  { %s752_s0 = inlined_call_operand.vmem [shape: f32[8,128], index: 0, kind: input, shape index: {}]   ;;  %s753_s1 = inlined_call_operand.vmem [shape: f32[1,128], index: 1, kind: input, shape index: {}]   ;;  %s754_s2 = inlined_call_operand.vmem [shape: f32[1,128], index: 2, kind: input, shape index: {}]   ;;  %s755_s3 = inlined_call_operand.vmem [shape: f32[1,128], index: 3, kind: input, shape index: {}]   ;;  %s756_s4 = inlined_call_operand.vmem [shape: f32[8,24], index: 4, kind: input, shape index: {}]   ;;  %s757_s5 = inlined_call_operand.vmem [shape: f32[8,1], index: 5, kind: input, shape index: {}]   ;;  %s758_s6 = inlined_call_operand.vmem [shape: f32[8,1], index: 6, kind: input, shape index: {}]   ;;  %s759_s7 = inlined_call_operand.vmem [shape: f32[8,1], index: 7, kind: input, shape index: {}]   ;;  %s760_s8 = inlined_call_operand.vmem [shape: f32[8,24], index: 8, kind: input, shape index: {}]   ;;  %s761_s9 = inlined_call_operand.vmem [shape: f32[8,1], index: 9, kind: input, shape index: {}]   ;;  %s762_s10 = inlined_call_operand.vmem [shape: f32[8,1], index: 10, kind: input, shape index: {}]   ;;  %s763_s11 = inlined_call_operand.vmem [shape: f32[8,1], index: 11, kind: input, shape index: {}]   ;;  %s764_s12 = inlined_call_operand.vmem [shape: f32[8,8], index: 12, kind: input, shape index: {}]   ;;  %s765_s13 = inlined_call_operand.vmem [shape: f32[8,1], index: 13, kind: input, shape index: {}]   ;;  %s766_s14 = inlined_call_operand.vmem [shape: f32[8,1], index: 14, kind: input, shape index: {}]   ;;  %s767_s15 = inlined_call_operand.vmem [shape: f32[8,1], index: 15, kind: input, shape index: {}]   ;;  %s768_s16 = inlined_call_operand.hbm [shape: f32[8,128], index: 16, kind: output, shape index: {}]  }
   0x1   :  { %769 = sst [smem:[#allocation5_spill]] %s752_s0 }
   0x2   :  { %s770_s23 = sld [smem:[#allocation5_spill]]  ;;  %s559_s24 = smov 1   ;;  %v560_v1 = vmov 0.0|0.0   ;;  %vm561_vm0 = vmmov 0   ;;  %v562_v2 = vmov 0.0   ;;  %v59_v3 = vld [vmem:[%s757_s5] sm:$0xff] }
   0x3   :  { %514 = vmatprep.subr.bf16.mxu0 %v560_v1  ;;  %497 = vmatprep.mubr.msk.f32.mxu0 %vm561_vm0, %v562_v2 }
   0x8   :  { %v54_v0 = vld [vmem:[%s770_s23] sm:$0xff] }
   0x9   :  { %61 = vrot.lane.b32.xlu0 %v54_v0, %s559_s24 }
   0xa   :  { %21 = vsyncpa [#allocation3], 0  ;;  %v563_v4 = vmov 0   ;;  %517 = vmatprep.subr.bf16.mxu1 %v560_v1  ;;  %s564_s27 = smov 127   ;;  %506 = vmatprep.mubr.msk.f32.mxu1 %vm561_vm0, %v562_v2  ;;  %vm64_vm1 = vcmask 7168   ;;  %vm69_vm2 = vcmask 1039360  }
   0xb   :  { %527 = vset.pattern.permute.xlu1 %v563_v4  ;;  %528 = vset.pattern.permute.xlu0 %v563_v4  ;;  %v666_v5 = vld [vmem:[%s753_s1] ss:$0 sm:$0xff]  ;;  %vm90_vm3 = vcmask 195584   ;;  %vm346_vm4 = vcmask 64512  }
   0xc   :  { %87 = vperm.xlu1 %527, %v59_v3   ;;  %v673_v9 = vld [vmem:[%s754_s2] ss:$0 sm:$0xff] }
   0xd   :  { %66 = vrot.lane.b32.xlu0 %v54_v0, %s564_s27  ;;  %v58_v14 = vld [vmem:[%s756_s4] sm:$0xff] }
   0xe   :  { %v688_v17 = vld [vmem:[%s755_s3] ss:$0 sm:$0xff] }
   0xf   :  { %v339_v31 = vld [vmem:[%s764_s12] sm:$0xff] }
  0x10   :  { %v177_v33 = vld [vmem:[%s758_s6] sm:$0xff] }
  0x11   :  { %v178_v36 = vld [vmem:[%s759_s7] sm:$0xff] }
  0x12   :  { %v211_v39 = vld [vmem:[%s761_s9] sm:$0xff] }
  0x13   :  { %v340_v45 = vld [vmem:[%s765_s13] sm:$0xff] }
  0x14   :  { %v210_v55 = vld [vmem:[%s760_s8] sm:$0xff] }
  0x7b   :  { %v62_v6 = vpop.permute.xlu0 %61 }
  0x7c   :  { %v65_v7 = vsel %vm64_vm1, 0.0, %v62_v6 }
  0x7d   :  { %v77_v8 = vmul.f32 %v666_v5, %v65_v7 }
  0x7f   :  { %v515_v10 = vpack.c.bf16 %v54_v0, %v77_v8  ;;  %v67_v11 = vpop.permute.xlu0 %66 }
  0x80   :  { %v70_v12 = vsel %vm69_vm2, %v67_v11, 0.0 }
  0x81   :  { %516 = vmatpush3.bf16.msra.mxu0 %v515_v10  ;;  %v84_v13 = vmul.f32 %v673_v9, %v70_v12 }
  0x82   :  { %495 = vmatprep.subr.mxu0 %v562_v2 }
  0x85   :  { %496 = vmatpush3.msra.mxu0 %v84_v13 }
  0x86   :  { %498 = vmatmul.mubr.msk.f32.vlgmr.msra.gmra.mrb[0].mxu0 %vm90_vm3, %v58_v14  ;;  %509 = vmatprep.subr.mxu0 %v562_v2 }
  0x87   :  { %510 = vmatpush3.msra.mxu0 %v54_v0  ;;  %511 = vmatprep.mubr.msk.f32.mxu0 %vm561_vm0, %v562_v2 }
  0x8a   :  { %512 = vmatmul.mubr.msk.f32.vlgmr.msra.gmra.mrb[2].mxu0 %vm346_vm4, %v339_v31  ;;  %v428_v31 = vld [vmem:[%s767_s15] sm:$0xff] }
  0x8b   :  { %v88_v15 = vpop.permute.xlu1 %87 }
 0x159   :  { %v160_v16 = vpop.f32.mrb[0].mxu0 }
 0x15a   :  { %v161_v18 = vadd.f32 %v160_v16, %v88_v15  ;;  %v499_v19 = vpop.f32.mrb[1].mxu0 }
 0x15c   :  { %v170_v20 = vmul.f32 %v688_v17, %v161_v18 }
 0x15d   :  { %v416_v46 = vpop.f32.mrb[2].mxu0 }
 0x15e   :  { %171 = vadd.xlane.f32.xlu1 %v170_v20  ;;  %v173_v21 = vmul.f32 %v170_v20, %v170_v20  ;;  %v513_v47 = vpop.f32.mrb[3].mxu0 }
 0x160   :  { %174 = vadd.xlane.f32.xlu0 %v173_v21 }
 0x1eb   :  { %v172_v22 = vpop.xlane.xlu1 %171 }
 0x1ed   :  { %v175_v23 = vpop.xlane.xlu0 %174 }
 0x1ee   :  { %v176_v24 = vsel %vm64_vm1, %v172_v22, %v175_v23  ;;  %v308_v22 = vld [vmem:[%s762_s10] sm:$0xff]  ;;  %s565_s10 = smov [#allocation2]  }
 0x1ef   :  { %v180_v25 = vmul.f32 0.03125, %v176_v24 }
 0x1f1   :  { %v181_v26 = vmul.f32 %v180_v25, %v180_v25 }
 0x1f3   :  { %183 = vrot.lane.b32.xlu0 %v181_v26, %s559_s24 }
 0x265   :  { %v184_v27 = vpop.permute.xlu0 %183 }
 0x266   :  { %v186_v28 = vsub.f32 %v180_v25, %v184_v27  ;;  %v427_v27 = vld [vmem:[%s766_s14] sm:$0xff] }
 0x268   :  { %v187_v29 = vmax.f32 %v186_v28, 0.0 }
 0x26a   :  { %v188_v30 = vadd.f32 1e-05, %v187_v29 }
 0x26c   :  { %529 = vrsqrt.f32 %v188_v30 }
 0x276   :  { %v530_v32 = vpop.eup %529 }
 0x277   :  { %191 = vrot.lane.b32.xlu1 %v530_v32, %s564_s27 }
 0x2e9   :  { %v192_v34 = vpop.permute.xlu1 %191 }
 0x2ea   :  { %v194_v35 = vmul.f32 %v192_v34, %v177_v33 }
 0x2ec   :  { %v195_v37 = vmul.f32 %v194_v35, %v180_v25  ;;  %199 = vperm.xlu1 %527, %v194_v35   ;;  %v309_v25 = vld [vmem:[%s763_s11] sm:$0xff]  ;;  %s467_s11 = sshll.u32 %s565_s10, 4  ;;  %s468_s11 = int_to_ptr.vmem [resolvable:$true] %s467_s11 }
 0x2ed   :  { %s535_s14 = scalar_lea.vmem %s468_s11, 128  ;;  %p540_p1 = scmp.lt.s32.totalorder %s468_s11, %s468_s11 }
 0x2ee   :  { %v196_v38 = vsub.f32 %v178_v36, %v195_v37  ;;  %p536_p0 = scmp.ne.s32.totalorder %s468_s11, %s535_s14  ;;  %p541_p2 = scmp.lt.s32.totalorder %s535_s14, %s535_s14 }
 0x2f0   :  { %205 = vperm.xlu0 %528, %v196_v38   ;;  %p542_p3 = por %p541_p2, %p540_p1 }
 0x2f2   :  { %p543_p4 = pnand %p542_p3, %p536_p0 }
 0x2f4   :  { %225 = vperm.xlu0 %528, %v211_v39  }
 0x36b   :  { %v200_v40 = vpop.permute.xlu1 %199 }
 0x36c   :  { %v202_v41 = vmul.f32 %v200_v40, %v161_v18 }
 0x36f   :  { %v206_v42 = vpop.permute.xlu0 %205 }
 0x370   :  { %v208_v43 = vadd.f32 %v206_v42, %v202_v41 }
 0x372   :  { %v209_v44 = vmax.f32 %v208_v43, 0.0 }
 0x373   :  { %v226_v56 = vpop.permute.xlu0 %225 }
 0x374   :  { %213 = vrot.lane.b32.xlu1 %v209_v44, %s559_s24 }
 0x378   :  { %217 = vrot.lane.b32.xlu1 %v209_v44, %s564_s27 }
 0x37c   :  { %343 = vperm.xlu1 %527, %v340_v45  }
 0x3e6   :  { %v214_v48 = vpop.permute.xlu1 %213 }
 0x3e7   :  { %v216_v49 = vsel %vm64_vm1, 0.0, %v214_v48 }
 0x3e8   :  { %v221_v50 = vmul.f32 %v666_v5, %v216_v49 }
 0x3ea   :  { %v218_v51 = vpop.permute.xlu1 %217  ;;  %v518_v52 = vpack.c.bf16 %v209_v44, %v221_v50 }
 0x3eb   :  { %v220_v53 = vsel %vm69_vm2, %v218_v51, 0.0 }
 0x3ec   :  { %519 = vmatpush3.bf16.msra.mxu1 %v518_v52  ;;  %v222_v54 = vmul.f32 %v673_v9, %v220_v53 }
 0x3ed   :  { %504 = vmatprep.subr.mxu1 %v562_v2 }
 0x3f0   :  { %505 = vmatpush3.msra.mxu1 %v222_v54 }
 0x3f1   :  { %507 = vmatmul.mubr.msk.f32.vlgmr.msra.gmra.mrb[0].mxu1 %vm90_vm3, %v210_v55 }
 0x3fb   :  { %v344_v57 = vpop.permute.xlu1 %343 }
 0x3fc   :  { %v417_v61 = vadd.f32 %v416_v46, %v344_v57 }
 0x3fe   :  { %v420_v0 = vmul.f32 %v688_v17, %v417_v61 }
 0x400   :  { %v423_v1 = vmul.f32 %v420_v0, %v420_v0 }
 0x4c4   :  { %v297_v58 = vpop.f32.mrb[0].mxu1 }
 0x4c5   :  { %v298_v59 = vadd.f32 %v297_v58, %v226_v56  ;;  %v508_v60 = vpop.f32.mrb[1].mxu1 }
 0x4c7   :  { %v301_v62 = vmul.f32 %v688_v17, %v298_v59 }
 0x4c9   :  { %302 = vadd.xlane.f32.xlu0 %v301_v62  ;;  %v304_v63 = vmul.f32 %v301_v62, %v301_v62 }
 0x4cb   :  { %305 = vadd.xlane.f32.xlu1 %v304_v63 }
 0x4cd   :  { %421 = vadd.xlane.f32.xlu0 %v420_v0 }
 0x4d1   :  { %424 = vadd.xlane.f32.xlu0 %v423_v1 }
 0x556   :  { %v303_v2 = vpop.xlane.xlu0 %302 }
 0x558   :  { %v306_v3 = vpop.xlane.xlu1 %305 }
 0x559   :  { %v307_v4 = vsel %vm64_vm1, %v303_v2, %v306_v3 }
 0x55a   :  { %v310_v5 = vmul.f32 0.03125, %v307_v4  ;;  %v422_v6 = vpop.xlane.xlu0 %421 }
 0x55c   :  { %v311_v7 = vmul.f32 %v310_v5, %v310_v5 }
 0x55e   :  { %313 = vrot.lane.b32.xlu1 %v311_v7, %s559_s24  ;;  %v425_v8 = vpop.xlane.xlu0 %424 }
 0x55f   :  { %v426_v9 = vsel %vm64_vm1, %v422_v6, %v425_v8 }
 0x560   :  { %v429_v10 = vmul.f32 0.03125, %v426_v9 }
 0x562   :  { %v430_v11 = vmul.f32 %v429_v10, %v429_v10 }
 0x564   :  { %432 = vrot.lane.b32.xlu0 %v430_v11, %s559_s24 }
 0x5d0   :  { %v314_v12 = vpop.permute.xlu1 %313 }
 0x5d1   :  { %v316_v13 = vsub.f32 %v310_v5, %v314_v12 }
 0x5d3   :  { %v317_v14 = vmax.f32 %v316_v13, 0.0 }
 0x5d5   :  { %v318_v15 = vadd.f32 1e-05, %v317_v14 }
 0x5d6   :  { %v433_v16 = vpop.permute.xlu0 %432 }
 0x5d7   :  { %531 = vrsqrt.f32 %v318_v15  ;;  %v435_v17 = vsub.f32 %v429_v10, %v433_v16 }
 0x5d9   :  { %v436_v18 = vmax.f32 %v435_v17, 0.0 }
 0x5db   :  { %v437_v19 = vadd.f32 1e-05, %v436_v18 }
 0x5dd   :  { %533 = vrsqrt.f32 %v437_v19 }
 0x5e1   :  { %v532_v20 = vpop.eup %531 }
 0x5e2   :  { %321 = vrot.lane.b32.xlu1 %v532_v20, %s564_s27 }
 0x5e7   :  { %v534_v21 = vpop.eup %533 }
 0x5e8   :  { %440 = vrot.lane.b32.xlu1 %v534_v21, %s564_s27 }
 0x654   :  { %v322_v23 = vpop.permute.xlu1 %321 }
 0x655   :  { %v324_v24 = vmul.f32 %v322_v23, %v308_v22 }
 0x657   :  { %v325_v26 = vmul.f32 %v324_v24, %v310_v5  ;;  %329 = vperm.xlu0 %528, %v324_v24  }
 0x659   :  { %v326_v28 = vsub.f32 %v309_v25, %v325_v26 }
 0x65a   :  { %v441_v29 = vpop.permute.xlu1 %440 }
 0x65b   :  { %v443_v30 = vmul.f32 %v441_v29, %v427_v27  ;;  %335 = vperm.xlu1 %527, %v326_v28  }
 0x65d   :  { %v444_v32 = vmul.f32 %v443_v30, %v429_v10  ;;  %448 = vperm.xlu0 %528, %v443_v30  }
 0x65f   :  { %v445_v33 = vsub.f32 %v428_v31, %v444_v32 }
 0x661   :  { %455 = vperm.xlu1 %527, %v445_v33  }
 0x6d6   :  { %v330_v34 = vpop.permute.xlu0 %329 }
 0x6d7   :  { %v332_v36 = vmul.f32 %v330_v34, %v298_v59 }
 0x6da   :  { %v336_v35 = vpop.permute.xlu1 %335 }
 0x6db   :  { %v338_v38 = vadd.f32 %v336_v35, %v332_v36 }
 0x6dc   :  { %v449_v37 = vpop.permute.xlu0 %448 }
 0x6dd   :  { %v451_v39 = vmul.f32 %v449_v37, %v417_v61 }
 0x6df   :  { %v452_v40 = vadd.f32 %v451_v39, %v338_v38 }
 0x6e0   :  { %v456_v41 = vpop.permute.xlu1 %455 }
 0x6e1   :  { %v458_v42 = vadd.f32 %v456_v41, %v452_v40 }
 0x6e3   :  { %v459_v43 = vmax.f32 %v458_v42, 0.0 }
 0x6e5   :  { %460 = vst [vmem:[#allocation2] sm:$0xff] %v459_v43 }
 0x6e6   :  { %546 = shalt.err (!%p543_p4)
}
 0x6e7   :  { %s547_s30 = scalar_lea.hbm %s768_s16, 128 }
 0x6e8   :  { %p548_p5 = scmp.ne.s32.totalorder %s768_s16, %s547_s30  ;;  %p551_p6 = scmp.lt.u32.totalorder %s547_s30, %s768_s16 }
 0x6ea   :  { %p553_p7 = pnand %p551_p6, %p548_p5 }
 0x6ec   :  { %556 = shalt.err (!%p553_p7)
}
 0x6ed   :  { %470 = dma.vmem_to_hbm [thread:$0]  %s468_s11, 128, %s768_s16, [#allocation3]  }
 0x6ee   :  { %557 = dma.done.wait [#allocation3], 128  }
 0x6ef   :  { %558 = vsyncadd [#allocation3], 4294967168 }
 0x6f0   :  { %474 = vsyncpa [#allocation3], 1 }

</bundles_post_ra>
